<compile_context>
chip_gen: v7x
topology: tpu7x:2x2x1
jax: 0.10.0
libtpu: 0.0.40
codegen_flags: <defaults>
</compile_context>

<pallas_src>
import math
from functools import partial

import jax
import jax.numpy as jnp
from jax.experimental import pallas as pl
from jax.experimental.pallas import tpu as pltpu


def _round_up(v, m):
    return ((v + m - 1) // m) * m


# ---------------------------------------------------------------------------
# Kernel 1: row-tiled batched matmul + bias  (input projection & embedding)
# ---------------------------------------------------------------------------
def _matmul_bias_kernel(x_ref, w_ref, b_ref, o_ref):
    o_ref[...] = (
        jnp.dot(x_ref[...], w_ref[...], preferred_element_type=jnp.float32)
        + b_ref[...]
    ).astype(o_ref.dtype)


def matmul_bias(x2d, w, bias):
    """(M, K) @ (K, N) + (1, N) -> (M, N) f32, megacore-parallel over row tiles."""
    M, K = x2d.shape
    N = w.shape[1]
    # Row tile: large for HBM roofline, padded (not shrunk) for awkward M.
    # On v5e with very large N, cap at 256 / set vmem_limit_bytes (see review).
    tm = min(512, _round_up(M, 8))
    Mp = _round_up(M, tm)
    if Mp != M:
        x2d = jnp.pad(x2d, ((0, Mp - M), (0, 0)))
    out = pl.pallas_call(
        _matmul_bias_kernel,
        out_shape=jax.ShapeDtypeStruct((Mp, N), jnp.float32),
        grid_spec=pltpu.PrefetchScalarGridSpec(
            num_scalar_prefetch=0,
            grid=(Mp // tm,),
            in_specs=[
                pl.BlockSpec((tm, K), lambda i: (i, 0)),
                # constant-index weight / bias blocks: single-buffered
                pl.BlockSpec((K, N), lambda i: (0, 0), pipeline_mode=pl.Buffered(1)),
                pl.BlockSpec((1, N), lambda i: (0, 0), pipeline_mode=pl.Buffered(1)),
            ],
            out_specs=pl.BlockSpec((tm, N), lambda i: (i, 0)),
        ),
        compiler_params=pltpu.CompilerParams(dimension_semantics=("parallel",)),
    )(x2d, w, bias)
    return out[:M] if Mp != M else out


# ---------------------------------------------------------------------------
# Kernel 2: LSTM recurrence, T-chunked, h/c carried in VMEM scratch
# ---------------------------------------------------------------------------
def _lstm_recurrence_kernel(gx_ref, w_hh_ref, hs_ref, h_scr, c_scr):
    # gx_ref  : (Tc, bc, 4*nH)  precomputed x @ W_ih^T + (b_ih + b_hh), gates [i|f|g|o]
    # w_hh_ref: (nH, 4*nH)      fused recurrent weights (input-major), single-buffered
    # hs_ref  : (Tc, bc, nH)    hidden-state output chunk
    # h_scr/c_scr : (bc, nH)    VMEM scratch carried across T-chunks of one batch slice
    nH = hs_ref.shape[2]
    Tc = gx_ref.shape[0]

    @pl.when(pl.program_id(1) == 0)  # first T-chunk for this batch slice
    def _():
        h_scr[...] = jnp.zeros_like(h_scr)
        c_scr[...] = jnp.zeros_like(c_scr)

    def sigmoid(v):
        # Exact rewrite: single EUP tanh push, mul/add on VPU slack of the serial step.
        return 0.5 * jnp.tanh(0.5 * v) + 0.5

    def step(t, _):
        h = h_scr[...]
        c = c_scr[...]
        # One wide MXU matmul per step; weights streamed from the VMEM ref (no vreg
        # hoisting -> no spills for large nH).
        gates = gx_ref[t] + jnp.dot(
            h, w_hh_ref[...], preferred_element_type=jnp.float32)
        i_g = sigmoid(gates[:, 0 * nH:1 * nH])
        f_g = sigmoid(gates[:, 1 * nH:2 * nH])
        g_g = jnp.tanh(gates[:, 2 * nH:3 * nH])
        o_g = sigmoid(gates[:, 3 * nH:4 * nH])
        c_new = f_g * c + i_g * g_g
        h_new = o_g * jnp.tanh(c_new)
        hs_ref[t] = h_new
        h_scr[...] = h_new
        c_scr[...] = c_new
        return 0

    jax.lax.fori_loop(0, Tc, step, 0, unroll=(Tc <= 8))


def _pick_t_chunk(T, b, nH, budget_bytes=4 << 20):
    """Largest divisor of T whose double-buffered gx+hs chunk fits the VMEM budget."""
    per_t = (b * 4 * nH + b * nH) * 4 * 2  # f32, x2 for double-buffering
    cap = max(1, min(T, budget_bytes // max(per_t, 1)))
    if T >= 2:
        cap = min(cap, max(1, T // 2))  # >= 2 chunks -> gx fetch / hs writeback overlap
    for tc in range(cap, 0, -1):
        if T % tc == 0:
            return tc
    return 1


def _pick_batch_chunks(b):
    # Split the recurrence across the two v7x TensorCores only when each slice keeps
    # full 8-row sublanes (no effect on single-TC v5e/v6e).
    return 2 if (b % 16 == 0) else 1


def lstm_recurrence(gx, w_hh_all):
    T, b, four_nH = gx.shape
    nH = four_nH // 4
    tc = _pick_t_chunk(T, b, nH)
    nb = _pick_batch_chunks(b)
    bc = b // nb
    return pl.pallas_call(
        _lstm_recurrence_kernel,
        out_shape=jax.ShapeDtypeStruct((T, b, nH), jnp.float32),
        grid_spec=pltpu.PrefetchScalarGridSpec(
            num_scalar_prefetch=0,
            grid=(nb, T // tc),
            in_specs=[
                pl.BlockSpec((tc, bc, 4 * nH), lambda bi, ti: (ti, bi, 0)),
                pl.BlockSpec((nH, 4 * nH), lambda bi, ti: (0, 0),
                             pipeline_mode=pl.Buffered(1)),
            ],
            out_specs=pl.BlockSpec((tc, bc, nH), lambda bi, ti: (ti, bi, 0)),
            scratch_shapes=[
                pltpu.VMEM((bc, nH), jnp.float32),  # h carry
                pltpu.VMEM((bc, nH), jnp.float32),  # c carry
            ],
        ),
        compiler_params=pltpu.CompilerParams(
            dimension_semantics=("parallel", "arbitrary")),
    )(gx, w_hh_all)


# ---------------------------------------------------------------------------
# Forward wrapper
# ---------------------------------------------------------------------------
@partial(jax.jit, static_argnames=("n_out",))
def bidirectional_lstm_forward(x, params, *, n_out):
    """x: (T, b, nIn) float32 -> (T, b, n_out)."""
    T, b, nIn = x.shape
    nH = params["w_hh_all"].shape[0]

    # 1) Hoisted, lane-dense input projection with LSTM biases folded in.
    #    Output layout (T, b, 4*nH) is exactly what the recurrence consumes: no transpose.
    gx = matmul_bias(x.reshape(T * b, nIn), params["w_ih"], params["bias"])
    gx = gx.reshape(T, b, 4 * nH)

    # 2) Serial LSTM recurrence: one fused h@W_hh matmul + cell math per step.
    hs = lstm_recurrence(gx, params["w_hh_all"])  # (T, b, nH)

    # 3) Deferred embedding Linear, output padded to a multiple of 128 lanes.
    out2d = matmul_bias(hs.reshape(T * b, nH), params["w_emb_pad"], params["b_emb_pad"])
    return out2d[:, :n_out].reshape(T, b, n_out)


# ---------------------------------------------------------------------------
# Parameter handling (PyTorch shapes -> kernel layouts)
# ---------------------------------------------------------------------------
def init_pytorch_params(key, nIn, nHidden, nOut):
    """Deterministic init with PyTorch parameter shapes (uniform(-k, k))."""
    k = 1.0 / math.sqrt(nHidden)
    ks = jax.random.split(key, 6)
    return {
        "weight_ih": jax.random.uniform(ks[0], (4 * nHidden, nIn), jnp.float32, -k, k),
        "weight_hh": jax.random.uniform(ks[1], (4 * nHidden, nHidden), jnp.float32, -k, k),
        "bias_ih": jax.random.uniform(ks[2], (4 * nHidden,), jnp.float32, -k, k),
        "bias_hh": jax.random.uniform(ks[3], (4 * nHidden,), jnp.float32, -k, k),
        "weight_emb": jax.random.uniform(ks[4], (nOut, nHidden), jnp.float32, -k, k),
        "bias_emb": jax.random.uniform(ks[5], (nOut,), jnp.float32, -k, k),
    }


def prepare_kernel_params(pt):
    nH = pt["weight_hh"].shape[1]
    nOut = pt["weight_emb"].shape[0]
    n_pad = _round_up(nOut, 128)  # lane-dense output width for the embedding matmul

    w_emb = pt["weight_emb"].T  # (nH, nOut)
    w_emb_pad = jnp.zeros((nH, n_pad), jnp.float32).at[:, :nOut].set(w_emb)
    b_emb_pad = jnp.zeros((1, n_pad), jnp.float32).at[0, :nOut].set(pt["bias_emb"])

    return {
        # (nIn, 4H), columns in PyTorch gate order [i|f|g|o]
        "w_ih": pt["weight_ih"].T,
        # (1, 4H): b_ih + b_hh folded once into the batched input projection
        "bias": (pt["bias_ih"] + pt["bias_hh"])[None, :],
        # (nH, 4H): fused recurrent weights, same [i|f|g|o] column order as gx
        "w_hh_all": pt["weight_hh"].T,
        # lane-dense padded embedding weight / bias
        "w_emb_pad": w_emb_pad,
        "b_emb_pad": b_emb_pad,
    }


# ---------------------------------------------------------------------------
# Pure-JAX reference (identical semantics to the PyTorch module's forward)
# ---------------------------------------------------------------------------
def reference_forward(x, pt):
    T, b, nIn = x.shape
    nH = pt["weight_hh"].shape[1]
    w_ih = pt["weight_ih"].T
    w_hh = pt["weight_hh"].T
    bias = (pt["bias_ih"] + pt["bias_hh"])[None, :]
    w_emb = pt["weight_emb"].T
    b_emb = pt["bias_emb"][None, :]

    def step(carry, xt):
        h, c = carry
        gates = xt @ w_ih + h @ w_hh + bias
        i_g = jax.nn.sigmoid(gates[:, 0 * nH:1 * nH])
        f_g = jax.nn.sigmoid(gates[:, 1 * nH:2 * nH])
        g_g = jnp.tanh(gates[:, 2 * nH:3 * nH])
        o_g = jax.nn.sigmoid(gates[:, 3 * nH:4 * nH])
        c_new = f_g * c + i_g * g_g
        h_new = o_g * jnp.tanh(c_new)
        return (h_new, c_new), h_new

    h0 = jnp.zeros((b, nH), jnp.float32)
    c0 = jnp.zeros((b, nH), jnp.float32)
    _, hs = jax.lax.scan(step, (h0, c0), x)  # (T, b, nH)
    return hs @ w_emb + b_emb                # (T, b, nOut)


if __name__ == "__main__":
    T, b, nIn, nHidden, nOut = 8, 2, 16, 32, 10
    key = jax.random.PRNGKey(0)
    kx, kp = jax.random.split(key)
    x = jax.random.normal(kx, (T, b, nIn), jnp.float32)

    pt_params = init_pytorch_params(kp, nIn, nHidden, nOut)
    params = prepare_kernel_params(pt_params)

    out = bidirectional_lstm_forward(x, params, n_out=nOut)
    out = jax.block_until_ready(out)

    ref = reference_forward(x, pt_params)
    assert out.shape == (T, b, nOut)
    assert jnp.allclose(out, ref, atol=1e-4, rtol=1e-4), "mismatch vs reference"
    print("KERNEL_OK")
</pallas_src>

<mosaic_0001>
module attributes {stable_mosaic.version = 11 : i64} {
  func.func @_matmul_bias_kernel(%arg0: i32, %arg1: memref<16x32xf32, #tpu.memory_space<vmem>>, %arg2: memref<32x128xf32, #tpu.memory_space<vmem>>, %arg3: memref<1x128xf32, #tpu.memory_space<vmem>>, %arg4: memref<16x128xf32, #tpu.memory_space<vmem>>) attributes {dimension_semantics = [#tpu.dimension_semantics<parallel>], iteration_bounds = array<i64: 1>, scalar_prefetch = 0 : i64, scratch_operands = 0 : i64, tpu.core_type = #tpu.core_type<tc>, window_params = [{transform_indices = @transform_0, window_bounds = array<i64: 16, 32>}, {pipeline_mode = #tpu.pipeline_mode<synchronous>, transform_indices = @transform_1, window_bounds = array<i64: 32, 128>}, {pipeline_mode = #tpu.pipeline_mode<synchronous>, transform_indices = @transform_2, window_bounds = array<i64: 1, 128>}, {transform_indices = @transform_3, window_bounds = array<i64: 16, 128>}]} {
    %c0 = arith.constant 0 : index
    %c0_0 = arith.constant 0 : index
    %0 = vector.load %arg1[%c0, %c0_0] : memref<16x32xf32, #tpu.memory_space<vmem>>, vector<16x32xf32>
    %c0_1 = arith.constant 0 : index
    %c0_2 = arith.constant 0 : index
    %1 = vector.load %arg2[%c0_1, %c0_2] : memref<32x128xf32, #tpu.memory_space<vmem>>, vector<32x128xf32>
    %cst = arith.constant dense<0.000000e+00> : vector<16x128xf32>
    %2 = tpu.matmul %0, %1, %cst {dimension_numbers = #tpu.dot_dimension_numbers<[1], [0], [0], [1], [0, 0, 1, 1], [], []>} : vector<16x32xf32>, vector<32x128xf32>, vector<16x128xf32> -> vector<16x128xf32>
    %c0_3 = arith.constant 0 : index
    %c0_4 = arith.constant 0 : index
    %3 = vector.load %arg3[%c0_3, %c0_4] : memref<1x128xf32, #tpu.memory_space<vmem>>, vector<1x128xf32>
    %4 = vector.broadcast %3 : vector<1x128xf32> to vector<16x128xf32>
    %5 = arith.addf %2, %4 : vector<16x128xf32>
    %c0_5 = arith.constant 0 : index
    %c0_6 = arith.constant 0 : index
    %6 = vector.load %arg4[%c0_5, %c0_6] : memref<16x128xf32, #tpu.memory_space<vmem>>, vector<16x128xf32>
    tpu.vector_store %arg4[%c0_5, %c0_6], %5 {strides = array<i32>} : memref<16x128xf32, #tpu.memory_space<vmem>>, vector<16x128xf32>,
    return
  }
  func.func @transform_0(%arg0: i32) -> (i32, i32) {
    %c0_i32 = arith.constant 0 : i32
    %c0_i32_0 = arith.constant 0 : i32
    return %arg0, %c0_i32 : i32, i32
  }
  func.func @transform_1(%arg0: i32) -> (i32, i32) {
    %c0_i32 = arith.constant 0 : i32
    %c0_i32_0 = arith.constant 0 : i32
    %c0_i32_1 = arith.constant 0 : i32
    return %c0_i32, %c0_i32_0 : i32, i32
  }
  func.func @transform_2(%arg0: i32) -> (i32, i32) {
    %c0_i32 = arith.constant 0 : i32
    %c0_i32_0 = arith.constant 0 : i32
    %c0_i32_1 = arith.constant 0 : i32
    return %c0_i32, %c0_i32_0 : i32, i32
  }
  func.func @transform_3(%arg0: i32) -> (i32, i32) {
    %c0_i32 = arith.constant 0 : i32
    %c0_i32_0 = arith.constant 0 : i32
    return %arg0, %c0_i32 : i32, i32
  }
}

module attributes {stable_mosaic.version = 11 : i64} {
  func.func @_matmul_bias_kernel(%arg0: i32, %arg1: memref<16x16xf32, #tpu.memory_space<vmem>>, %arg2: memref<16x128xf32, #tpu.memory_space<vmem>>, %arg3: memref<1x128xf32, #tpu.memory_space<vmem>>, %arg4: memref<16x128xf32, #tpu.memory_space<vmem>>) attributes {dimension_semantics = [#tpu.dimension_semantics<parallel>], iteration_bounds = array<i64: 1>, scalar_prefetch = 0 : i64, scratch_operands = 0 : i64, tpu.core_type = #tpu.core_type<tc>, window_params = [{transform_indices = @transform_0, window_bounds = array<i64: 16, 16>}, {pipeline_mode = #tpu.pipeline_mode<synchronous>, transform_indices = @transform_1, window_bounds = array<i64: 16, 128>}, {pipeline_mode = #tpu.pipeline_mode<synchronous>, transform_indices = @transform_2, window_bounds = array<i64: 1, 128>}, {transform_indices = @transform_3, window_bounds = array<i64: 16, 128>}]} {
    %c0 = arith.constant 0 : index
    %c0_0 = arith.constant 0 : index
    %0 = vector.load %arg1[%c0, %c0_0] : memref<16x16xf32, #tpu.memory_space<vmem>>, vector<16x16xf32>
    %c0_1 = arith.constant 0 : index
    %c0_2 = arith.constant 0 : index
    %1 = vector.load %arg2[%c0_1, %c0_2] : memref<16x128xf32, #tpu.memory_space<vmem>>, vector<16x128xf32>
    %cst = arith.constant dense<0.000000e+00> : vector<16x128xf32>
    %2 = tpu.matmul %0, %1, %cst {dimension_numbers = #tpu.dot_dimension_numbers<[1], [0], [0], [1], [0, 0, 1, 1], [], []>} : vector<16x16xf32>, vector<16x128xf32>, vector<16x128xf32> -> vector<16x128xf32>
    %c0_3 = arith.constant 0 : index
    %c0_4 = arith.constant 0 : index
    %3 = vector.load %arg3[%c0_3, %c0_4] : memref<1x128xf32, #tpu.memory_space<vmem>>, vector<1x128xf32>
    %4 = vector.broadcast %3 : vector<1x128xf32> to vector<16x128xf32>
    %5 = arith.addf %2, %4 : vector<16x128xf32>
    %c0_5 = arith.constant 0 : index
    %c0_6 = arith.constant 0 : index
    %6 = vector.load %arg4[%c0_5, %c0_6] : memref<16x128xf32, #tpu.memory_space<vmem>>, vector<16x128xf32>
    tpu.vector_store %arg4[%c0_5, %c0_6], %5 {strides = array<i32>} : memref<16x128xf32, #tpu.memory_space<vmem>>, vector<16x128xf32>,
    return
  }
  func.func @transform_0(%arg0: i32) -> (i32, i32) {
    %c0_i32 = arith.constant 0 : i32
    %c0_i32_0 = arith.constant 0 : i32
    return %arg0, %c0_i32 : i32, i32
  }
  func.func @transform_1(%arg0: i32) -> (i32, i32) {
    %c0_i32 = arith.constant 0 : i32
    %c0_i32_0 = arith.constant 0 : i32
    %c0_i32_1 = arith.constant 0 : i32
    return %c0_i32, %c0_i32_0 : i32, i32
  }
  func.func @transform_2(%arg0: i32) -> (i32, i32) {
    %c0_i32 = arith.constant 0 : i32
    %c0_i32_0 = arith.constant 0 : i32
    %c0_i32_1 = arith.constant 0 : i32
    return %c0_i32, %c0_i32_0 : i32, i32
  }
  func.func @transform_3(%arg0: i32) -> (i32, i32) {
    %c0_i32 = arith.constant 0 : i32
    %c0_i32_0 = arith.constant 0 : i32
    return %arg0, %c0_i32 : i32, i32
  }
}

module attributes {stable_mosaic.version = 11 : i64} {
  func.func @_lstm_recurrence_kernel(%arg0: i32, %arg1: i32, %arg2: memref<4x2x128xf32, #tpu.memory_space<vmem>>, %arg3: memref<32x128xf32, #tpu.memory_space<vmem>>, %arg4: memref<4x2x32xf32, #tpu.memory_space<vmem>>, %arg5: memref<2x32xf32, #tpu.memory_space<vmem>>, %arg6: memref<2x32xf32, #tpu.memory_space<vmem>>) attributes {dimension_semantics = [#tpu.dimension_semantics<parallel>, #tpu.dimension_semantics<arbitrary>], iteration_bounds = array<i64: 1, 2>, scalar_prefetch = 0 : i64, scratch_operands = 2 : i64, tpu.core_type = #tpu.core_type<tc>, window_params = [{transform_indices = @transform_0, window_bounds = array<i64: 4, 2, 128>}, {pipeline_mode = #tpu.pipeline_mode<synchronous>, transform_indices = @transform_1, window_bounds = array<i64: 32, 128>}, {transform_indices = @transform_2, window_bounds = array<i64: 4, 2, 32>}]} {
    %c0_i32 = arith.constant 0 : i32
    %0 = arith.cmpi eq, %arg1, %c0_i32 : i32
    %1 = arith.extui %0 : i1 to i32
    %c0_i32_0 = arith.constant 0 : i32
    %2 = arith.cmpi ne, %1, %c0_i32_0 : i32
    scf.if %2 {
      %cst_96 = arith.constant 0.000000e+00 : f32
      %183 = vector.broadcast %cst_96 : f32 to vector<2x32xf32>
      %c0_97 = arith.constant 0 : index
      %c0_98 = arith.constant 0 : index
      %184 = vector.load %arg5[%c0_97, %c0_98] : memref<2x32xf32, #tpu.memory_space<vmem>>, vector<2x32xf32>
      tpu.vector_store %arg5[%c0_97, %c0_98], %183 {strides = array<i32>} : memref<2x32xf32, #tpu.memory_space<vmem>>, vector<2x32xf32>,
      %cst_99 = arith.constant 0.000000e+00 : f32
      %185 = vector.broadcast %cst_99 : f32 to vector<2x32xf32>
      %c0_100 = arith.constant 0 : index
      %c0_101 = arith.constant 0 : index
      %186 = vector.load %arg6[%c0_100, %c0_101] : memref<2x32xf32, #tpu.memory_space<vmem>>, vector<2x32xf32>
      tpu.vector_store %arg6[%c0_100, %c0_101], %185 {strides = array<i32>} : memref<2x32xf32, #tpu.memory_space<vmem>>, vector<2x32xf32>,
    } else {
    }
    %c0_i32_1 = arith.constant 0 : i32
    %c0 = arith.constant 0 : index
    %c0_2 = arith.constant 0 : index
    %3 = vector.load %arg5[%c0, %c0_2] : memref<2x32xf32, #tpu.memory_space<vmem>>, vector<2x32xf32>
    %c0_3 = arith.constant 0 : index
    %c0_4 = arith.constant 0 : index
    %4 = vector.load %arg6[%c0_3, %c0_4] : memref<2x32xf32, #tpu.memory_space<vmem>>, vector<2x32xf32>
    %5 = arith.index_cast %c0_i32_1 : i32 to index
    %c0_5 = arith.constant 0 : index
    %c0_6 = arith.constant 0 : index
    %6 = vector.load %arg2[%5, %c0_5, %c0_6] : memref<4x2x128xf32, #tpu.memory_space<vmem>>, vector<1x2x128xf32>
    %7 = vector.shape_cast %6 : vector<1x2x128xf32> to vector<2x128xf32>
    %c0_7 = arith.constant 0 : index
    %c0_8 = arith.constant 0 : index
    %8 = vector.load %arg3[%c0_7, %c0_8] : memref<32x128xf32, #tpu.memory_space<vmem>>, vector<32x128xf32>
    %cst = arith.constant dense<0.000000e+00> : vector<2x128xf32>
    %9 = tpu.matmul %3, %8, %cst {dimension_numbers = #tpu.dot_dimension_numbers<[1], [0], [0], [1], [0, 0, 1, 1], [], []>} : vector<2x32xf32>, vector<32x128xf32>, vector<2x128xf32> -> vector<2x128xf32>
    %10 = arith.addf %7, %9 : vector<2x128xf32>
    %11 = vector.extract_strided_slice %10 {offsets = [0, 0], sizes = [2, 32], strides = [1, 1]} : vector<2x128xf32> to vector<2x32xf32>
    %cst_9 = arith.constant 5.000000e-01 : f32
    %12 = vector.broadcast %cst_9 : f32 to vector<2x32xf32>
    %13 = arith.mulf %12, %11 : vector<2x32xf32>
    %14 = math.tanh %13 : vector<2x32xf32>
    %cst_10 = arith.constant 5.000000e-01 : f32
    %15 = vector.broadcast %cst_10 : f32 to vector<2x32xf32>
    %16 = arith.mulf %15, %14 : vector<2x32xf32>
    %cst_11 = arith.constant 5.000000e-01 : f32
    %17 = vector.broadcast %cst_11 : f32 to vector<2x32xf32>
    %18 = arith.addf %16, %17 : vector<2x32xf32>
    %19 = vector.extract_strided_slice %10 {offsets = [0, 32], sizes = [2, 32], strides = [1, 1]} : vector<2x128xf32> to vector<2x32xf32>
    %cst_12 = arith.constant 5.000000e-01 : f32
    %20 = vector.broadcast %cst_12 : f32 to vector<2x32xf32>
    %21 = arith.mulf %20, %19 : vector<2x32xf32>
    %22 = math.tanh %21 : vector<2x32xf32>
    %cst_13 = arith.constant 5.000000e-01 : f32
    %23 = vector.broadcast %cst_13 : f32 to vector<2x32xf32>
    %24 = arith.mulf %23, %22 : vector<2x32xf32>
    %cst_14 = arith.constant 5.000000e-01 : f32
    %25 = vector.broadcast %cst_14 : f32 to vector<2x32xf32>
    %26 = arith.addf %24, %25 : vector<2x32xf32>
    %27 = vector.extract_strided_slice %10 {offsets = [0, 64], sizes = [2, 32], strides = [1, 1]} : vector<2x128xf32> to vector<2x32xf32>
    %28 = math.tanh %27 : vector<2x32xf32>
    %29 = vector.extract_strided_slice %10 {offsets = [0, 96], sizes = [2, 32], strides = [1, 1]} : vector<2x128xf32> to vector<2x32xf32>
    %cst_15 = arith.constant 5.000000e-01 : f32
    %30 = vector.broadcast %cst_15 : f32 to vector<2x32xf32>
    %31 = arith.mulf %30, %29 : vector<2x32xf32>
    %32 = math.tanh %31 : vector<2x32xf32>
    %cst_16 = arith.constant 5.000000e-01 : f32
    %33 = vector.broadcast %cst_16 : f32 to vector<2x32xf32>
    %34 = arith.mulf %33, %32 : vector<2x32xf32>
    %cst_17 = arith.constant 5.000000e-01 : f32
    %35 = vector.broadcast %cst_17 : f32 to vector<2x32xf32>
    %36 = arith.addf %34, %35 : vector<2x32xf32>
    %37 = arith.mulf %26, %4 : vector<2x32xf32>
    %38 = arith.mulf %18, %28 : vector<2x32xf32>
    %39 = arith.addf %37, %38 : vector<2x32xf32>
    %40 = math.tanh %39 : vector<2x32xf32>
    %41 = arith.mulf %36, %40 : vector<2x32xf32>
    %42 = arith.index_cast %c0_i32_1 : i32 to index
    %c0_18 = arith.constant 0 : index
    %c0_19 = arith.constant 0 : index
    %43 = vector.load %arg4[%42, %c0_18, %c0_19] : memref<4x2x32xf32, #tpu.memory_space<vmem>>, vector<1x2x32xf32>
    %44 = vector.shape_cast %43 : vector<1x2x32xf32> to vector<2x32xf32>
    %45 = vector.shape_cast %41 : vector<2x32xf32> to vector<1x2x32xf32>
    tpu.vector_store %arg4[%42, %c0_18, %c0_19], %45 {strides = array<i32>} : memref<4x2x32xf32, #tpu.memory_space<vmem>>, vector<1x2x32xf32>,
    %c0_20 = arith.constant 0 : index
    %c0_21 = arith.constant 0 : index
    %46 = vector.load %arg5[%c0_20, %c0_21] : memref<2x32xf32, #tpu.memory_space<vmem>>, vector<2x32xf32>
    tpu.vector_store %arg5[%c0_20, %c0_21], %41 {strides = array<i32>} : memref<2x32xf32, #tpu.memory_space<vmem>>, vector<2x32xf32>,
    %c0_22 = arith.constant 0 : index
    %c0_23 = arith.constant 0 : index
    %47 = vector.load %arg6[%c0_22, %c0_23] : memref<2x32xf32, #tpu.memory_space<vmem>>, vector<2x32xf32>
    tpu.vector_store %arg6[%c0_22, %c0_23], %39 {strides = array<i32>} : memref<2x32xf32, #tpu.memory_space<vmem>>, vector<2x32xf32>,
    %c1_i32 = arith.constant 1 : i32
    %c0_24 = arith.constant 0 : index
    %c0_25 = arith.constant 0 : index
    %48 = vector.load %arg5[%c0_24, %c0_25] : memref<2x32xf32, #tpu.memory_space<vmem>>, vector<2x32xf32>
    %c0_26 = arith.constant 0 : index
    %c0_27 = arith.constant 0 : index
    %49 = vector.load %arg6[%c0_26, %c0_27] : memref<2x32xf32, #tpu.memory_space<vmem>>, vector<2x32xf32>
    %50 = arith.index_cast %c1_i32 : i32 to index
    %c0_28 = arith.constant 0 : index
    %c0_29 = arith.constant 0 : index
    %51 = vector.load %arg2[%50, %c0_28, %c0_29] : memref<4x2x128xf32, #tpu.memory_space<vmem>>, vector<1x2x128xf32>
    %52 = vector.shape_cast %51 : vector<1x2x128xf32> to vector<2x128xf32>
    %c0_30 = arith.constant 0 : index
    %c0_31 = arith.constant 0 : index
    %53 = vector.load %arg3[%c0_30, %c0_31] : memref<32x128xf32, #tpu.memory_space<vmem>>, vector<32x128xf32>
    %cst_32 = arith.constant dense<0.000000e+00> : vector<2x128xf32>
    %54 = tpu.matmul %48, %53, %cst_32 {dimension_numbers = #tpu.dot_dimension_numbers<[1], [0], [0], [1], [0, 0, 1, 1], [], []>} : vector<2x32xf32>, vector<32x128xf32>, vector<2x128xf32> -> vector<2x128xf32>
    %55 = arith.addf %52, %54 : vector<2x128xf32>
    %56 = vector.extract_strided_slice %55 {offsets = [0, 0], sizes = [2, 32], strides = [1, 1]} : vector<2x128xf32> to vector<2x32xf32>
    %cst_33 = arith.constant 5.000000e-01 : f32
    %57 = vector.broadcast %cst_33 : f32 to vector<2x32xf32>
    %58 = arith.mulf %57, %56 : vector<2x32xf32>
    %59 = math.tanh %58 : vector<2x32xf32>
    %cst_34 = arith.constant 5.000000e-01 : f32
    %60 = vector.broadcast %cst_34 : f32 to vector<2x32xf32>
    %61 = arith.mulf %60, %59 : vector<2x32xf32>
    %cst_35 = arith.constant 5.000000e-01 : f32
    %62 = vector.broadcast %cst_35 : f32 to vector<2x32xf32>
    %63 = arith.addf %61, %62 : vector<2x32xf32>
    %64 = vector.extract_strided_slice %55 {offsets = [0, 32], sizes = [2, 32], strides = [1, 1]} : vector<2x128xf32> to vector<2x32xf32>
    %cst_36 = arith.constant 5.000000e-01 : f32
    %65 = vector.broadcast %cst_36 : f32 to vector<2x32xf32>
    %66 = arith.mulf %65, %64 : vector<2x32xf32>
    %67 = math.tanh %66 : vector<2x32xf32>
    %cst_37 = arith.constant 5.000000e-01 : f32
    %68 = vector.broadcast %cst_37 : f32 to vector<2x32xf32>
    %69 = arith.mulf %68, %67 : vector<2x32xf32>
    %cst_38 = arith.constant 5.000000e-01 : f32
    %70 = vector.broadcast %cst_38 : f32 to vector<2x32xf32>
    %71 = arith.addf %69, %70 : vector<2x32xf32>
    %72 = vector.extract_strided_slice %55 {offsets = [0, 64], sizes = [2, 32], strides = [1, 1]} : vector<2x128xf32> to vector<2x32xf32>
    %73 = math.tanh %72 : vector<2x32xf32>
    %74 = vector.extract_strided_slice %55 {offsets = [0, 96], sizes = [2, 32], strides = [1, 1]} : vector<2x128xf32> to vector<2x32xf32>
    %cst_39 = arith.constant 5.000000e-01 : f32
    %75 = vector.broadcast %cst_39 : f32 to vector<2x32xf32>
    %76 = arith.mulf %75, %74 : vector<2x32xf32>
    %77 = math.tanh %76 : vector<2x32xf32>
    %cst_40 = arith.constant 5.000000e-01 : f32
    %78 = vector.broadcast %cst_40 : f32 to vector<2x32xf32>
    %79 = arith.mulf %78, %77 : vector<2x32xf32>
    %cst_41 = arith.constant 5.000000e-01 : f32
    %80 = vector.broadcast %cst_41 : f32 to vector<2x32xf32>
    %81 = arith.addf %79, %80 : vector<2x32xf32>
    %82 = arith.mulf %71, %49 : vector<2x32xf32>
    %83 = arith.mulf %63, %73 : vector<2x32xf32>
    %84 = arith.addf %82, %83 : vector<2x32xf32>
    %85 = math.tanh %84 : vector<2x32xf32>
    %86 = arith.mulf %81, %85 : vector<2x32xf32>
    %87 = arith.index_cast %c1_i32 : i32 to index
    %c0_42 = arith.constant 0 : index
    %c0_43 = arith.constant 0 : index
    %88 = vector.load %arg4[%87, %c0_42, %c0_43] : memref<4x2x32xf32, #tpu.memory_space<vmem>>, vector<1x2x32xf32>
    %89 = vector.shape_cast %88 : vector<1x2x32xf32> to vector<2x32xf32>
    %90 = vector.shape_cast %86 : vector<2x32xf32> to vector<1x2x32xf32>
    tpu.vector_store %arg4[%87, %c0_42, %c0_43], %90 {strides = array<i32>} : memref<4x2x32xf32, #tpu.memory_space<vmem>>, vector<1x2x32xf32>,
    %c0_44 = arith.constant 0 : index
    %c0_45 = arith.constant 0 : index
    %91 = vector.load %arg5[%c0_44, %c0_45] : memref<2x32xf32, #tpu.memory_space<vmem>>, vector<2x32xf32>
    tpu.vector_store %arg5[%c0_44, %c0_45], %86 {strides = array<i32>} : memref<2x32xf32, #tpu.memory_space<vmem>>, vector<2x32xf32>,
    %c0_46 = arith.constant 0 : index
    %c0_47 = arith.constant 0 : index
    %92 = vector.load %arg6[%c0_46, %c0_47] : memref<2x32xf32, #tpu.memory_space<vmem>>, vector<2x32xf32>
    tpu.vector_store %arg6[%c0_46, %c0_47], %84 {strides = array<i32>} : memref<2x32xf32, #tpu.memory_space<vmem>>, vector<2x32xf32>,
    %c2_i32 = arith.constant 2 : i32
    %c0_48 = arith.constant 0 : index
    %c0_49 = arith.constant 0 : index
    %93 = vector.load %arg5[%c0_48, %c0_49] : memref<2x32xf32, #tpu.memory_space<vmem>>, vector<2x32xf32>
    %c0_50 = arith.constant 0 : index
    %c0_51 = arith.constant 0 : index
    %94 = vector.load %arg6[%c0_50, %c0_51] : memref<2x32xf32, #tpu.memory_space<vmem>>, vector<2x32xf32>
    %95 = arith.index_cast %c2_i32 : i32 to index
    %c0_52 = arith.constant 0 : index
    %c0_53 = arith.constant 0 : index
    %96 = vector.load %arg2[%95, %c0_52, %c0_53] : memref<4x2x128xf32, #tpu.memory_space<vmem>>, vector<1x2x128xf32>
    %97 = vector.shape_cast %96 : vector<1x2x128xf32> to vector<2x128xf32>
    %c0_54 = arith.constant 0 : index
    %c0_55 = arith.constant 0 : index
    %98 = vector.load %arg3[%c0_54, %c0_55] : memref<32x128xf32, #tpu.memory_space<vmem>>, vector<32x128xf32>
    %cst_56 = arith.constant dense<0.000000e+00> : vector<2x128xf32>
    %99 = tpu.matmul %93, %98, %cst_56 {dimension_numbers = #tpu.dot_dimension_numbers<[1], [0], [0], [1], [0, 0, 1, 1], [], []>} : vector<2x32xf32>, vector<32x128xf32>, vector<2x128xf32> -> vector<2x128xf32>
    %100 = arith.addf %97, %99 : vector<2x128xf32>
    %101 = vector.extract_strided_slice %100 {offsets = [0, 0], sizes = [2, 32], strides = [1, 1]} : vector<2x128xf32> to vector<2x32xf32>
    %cst_57 = arith.constant 5.000000e-01 : f32
    %102 = vector.broadcast %cst_57 : f32 to vector<2x32xf32>
    %103 = arith.mulf %102, %101 : vector<2x32xf32>
    %104 = math.tanh %103 : vector<2x32xf32>
    %cst_58 = arith.constant 5.000000e-01 : f32
    %105 = vector.broadcast %cst_58 : f32 to vector<2x32xf32>
    %106 = arith.mulf %105, %104 : vector<2x32xf32>
    %cst_59 = arith.constant 5.000000e-01 : f32
    %107 = vector.broadcast %cst_59 : f32 to vector<2x32xf32>
    %108 = arith.addf %106, %107 : vector<2x32xf32>
    %109 = vector.extract_strided_slice %100 {offsets = [0, 32], sizes = [2, 32], strides = [1, 1]} : vector<2x128xf32> to vector<2x32xf32>
    %cst_60 = arith.constant 5.000000e-01 : f32
    %110 = vector.broadcast %cst_60 : f32 to vector<2x32xf32>
    %111 = arith.mulf %110, %109 : vector<2x32xf32>
    %112 = math.tanh %111 : vector<2x32xf32>
    %cst_61 = arith.constant 5.000000e-01 : f32
    %113 = vector.broadcast %cst_61 : f32 to vector<2x32xf32>
    %114 = arith.mulf %113, %112 : vector<2x32xf32>
    %cst_62 = arith.constant 5.000000e-01 : f32
    %115 = vector.broadcast %cst_62 : f32 to vector<2x32xf32>
    %116 = arith.addf %114, %115 : vector<2x32xf32>
    %117 = vector.extract_strided_slice %100 {offsets = [0, 64], sizes = [2, 32], strides = [1, 1]} : vector<2x128xf32> to vector<2x32xf32>
    %118 = math.tanh %117 : vector<2x32xf32>
    %119 = vector.extract_strided_slice %100 {offsets = [0, 96], sizes = [2, 32], strides = [1, 1]} : vector<2x128xf32> to vector<2x32xf32>
    %cst_63 = arith.constant 5.000000e-01 : f32
    %120 = vector.broadcast %cst_63 : f32 to vector<2x32xf32>
    %121 = arith.mulf %120, %119 : vector<2x32xf32>
    %122 = math.tanh %121 : vector<2x32xf32>
    %cst_64 = arith.constant 5.000000e-01 : f32
    %123 = vector.broadcast %cst_64 : f32 to vector<2x32xf32>
    %124 = arith.mulf %123, %122 : vector<2x32xf32>
    %cst_65 = arith.constant 5.000000e-01 : f32
    %125 = vector.broadcast %cst_65 : f32 to vector<2x32xf32>
    %126 = arith.addf %124, %125 : vector<2x32xf32>
    %127 = arith.mulf %116, %94 : vector<2x32xf32>
    %128 = arith.mulf %108, %118 : vector<2x32xf32>
    %129 = arith.addf %127, %128 : vector<2x32xf32>
    %130 = math.tanh %129 : vector<2x32xf32>
    %131 = arith.mulf %126, %130 : vector<2x32xf32>
    %132 = arith.index_cast %c2_i32 : i32 to index
    %c0_66 = arith.constant 0 : index
    %c0_67 = arith.constant 0 : index
    %133 = vector.load %arg4[%132, %c0_66, %c0_67] : memref<4x2x32xf32, #tpu.memory_space<vmem>>, vector<1x2x32xf32>
    %134 = vector.shape_cast %133 : vector<1x2x32xf32> to vector<2x32xf32>
    %135 = vector.shape_cast %131 : vector<2x32xf32> to vector<1x2x32xf32>
    tpu.vector_store %arg4[%132, %c0_66, %c0_67], %135 {strides = array<i32>} : memref<4x2x32xf32, #tpu.memory_space<vmem>>, vector<1x2x32xf32>,
    %c0_68 = arith.constant 0 : index
    %c0_69 = arith.constant 0 : index
    %136 = vector.load %arg5[%c0_68, %c0_69] : memref<2x32xf32, #tpu.memory_space<vmem>>, vector<2x32xf32>
    tpu.vector_store %arg5[%c0_68, %c0_69], %131 {strides = array<i32>} : memref<2x32xf32, #tpu.memory_space<vmem>>, vector<2x32xf32>,
    %c0_70 = arith.constant 0 : index
    %c0_71 = arith.constant 0 : index
    %137 = vector.load %arg6[%c0_70, %c0_71] : memref<2x32xf32, #tpu.memory_space<vmem>>, vector<2x32xf32>
    tpu.vector_store %arg6[%c0_70, %c0_71], %129 {strides = array<i32>} : memref<2x32xf32, #tpu.memory_space<vmem>>, vector<2x32xf32>,
    %c3_i32 = arith.constant 3 : i32
    %c0_72 = arith.constant 0 : index
    %c0_73 = arith.constant 0 : index
    %138 = vector.load %arg5[%c0_72, %c0_73] : memref<2x32xf32, #tpu.memory_space<vmem>>, vector<2x32xf32>
    %c0_74 = arith.constant 0 : index
    %c0_75 = arith.constant 0 : index
    %139 = vector.load %arg6[%c0_74, %c0_75] : memref<2x32xf32, #tpu.memory_space<vmem>>, vector<2x32xf32>
    %140 = arith.index_cast %c3_i32 : i32 to index
    %c0_76 = arith.constant 0 : index
    %c0_77 = arith.constant 0 : index
    %141 = vector.load %arg2[%140, %c0_76, %c0_77] : memref<4x2x128xf32, #tpu.memory_space<vmem>>, vector<1x2x128xf32>
    %142 = vector.shape_cast %141 : vector<1x2x128xf32> to vector<2x128xf32>
    %c0_78 = arith.constant 0 : index
    %c0_79 = arith.constant 0 : index
    %143 = vector.load %arg3[%c0_78, %c0_79] : memref<32x128xf32, #tpu.memory_space<vmem>>, vector<32x128xf32>
    %cst_80 = arith.constant dense<0.000000e+00> : vector<2x128xf32>
    %144 = tpu.matmul %138, %143, %cst_80 {dimension_numbers = #tpu.dot_dimension_numbers<[1], [0], [0], [1], [0, 0, 1, 1], [], []>} : vector<2x32xf32>, vector<32x128xf32>, vector<2x128xf32> -> vector<2x128xf32>
    %145 = arith.addf %142, %144 : vector<2x128xf32>
    %146 = vector.extract_strided_slice %145 {offsets = [0, 0], sizes = [2, 32], strides = [1, 1]} : vector<2x128xf32> to vector<2x32xf32>
    %cst_81 = arith.constant 5.000000e-01 : f32
    %147 = vector.broadcast %cst_81 : f32 to vector<2x32xf32>
    %148 = arith.mulf %147, %146 : vector<2x32xf32>
    %149 = math.tanh %148 : vector<2x32xf32>
    %cst_82 = arith.constant 5.000000e-01 : f32
    %150 = vector.broadcast %cst_82 : f32 to vector<2x32xf32>
    %151 = arith.mulf %150, %149 : vector<2x32xf32>
    %cst_83 = arith.constant 5.000000e-01 : f32
    %152 = vector.broadcast %cst_83 : f32 to vector<2x32xf32>
    %153 = arith.addf %151, %152 : vector<2x32xf32>
    %154 = vector.extract_strided_slice %145 {offsets = [0, 32], sizes = [2, 32], strides = [1, 1]} : vector<2x128xf32> to vector<2x32xf32>
    %cst_84 = arith.constant 5.000000e-01 : f32
    %155 = vector.broadcast %cst_84 : f32 to vector<2x32xf32>
    %156 = arith.mulf %155, %154 : vector<2x32xf32>
    %157 = math.tanh %156 : vector<2x32xf32>
    %cst_85 = arith.constant 5.000000e-01 : f32
    %158 = vector.broadcast %cst_85 : f32 to vector<2x32xf32>
    %159 = arith.mulf %158, %157 : vector<2x32xf32>
    %cst_86 = arith.constant 5.000000e-01 : f32
    %160 = vector.broadcast %cst_86 : f32 to vector<2x32xf32>
    %161 = arith.addf %159, %160 : vector<2x32xf32>
    %162 = vector.extract_strided_slice %145 {offsets = [0, 64], sizes = [2, 32], strides = [1, 1]} : vector<2x128xf32> to vector<2x32xf32>
    %163 = math.tanh %162 : vector<2x32xf32>
    %164 = vector.extract_strided_slice %145 {offsets = [0, 96], sizes = [2, 32], strides = [1, 1]} : vector<2x128xf32> to vector<2x32xf32>
    %cst_87 = arith.constant 5.000000e-01 : f32
    %165 = vector.broadcast %cst_87 : f32 to vector<2x32xf32>
    %166 = arith.mulf %165, %164 : vector<2x32xf32>
    %167 = math.tanh %166 : vector<2x32xf32>
    %cst_88 = arith.constant 5.000000e-01 : f32
    %168 = vector.broadcast %cst_88 : f32 to vector<2x32xf32>
    %169 = arith.mulf %168, %167 : vector<2x32xf32>
    %cst_89 = arith.constant 5.000000e-01 : f32
    %170 = vector.broadcast %cst_89 : f32 to vector<2x32xf32>
    %171 = arith.addf %169, %170 : vector<2x32xf32>
    %172 = arith.mulf %161, %139 : vector<2x32xf32>
    %173 = arith.mulf %153, %163 : vector<2x32xf32>
    %174 = arith.addf %172, %173 : vector<2x32xf32>
    %175 = math.tanh %174 : vector<2x32xf32>
    %176 = arith.mulf %171, %175 : vector<2x32xf32>
    %177 = arith.index_cast %c3_i32 : i32 to index
    %c0_90 = arith.constant 0 : index
    %c0_91 = arith.constant 0 : index
    %178 = vector.load %arg4[%177, %c0_90, %c0_91] : memref<4x2x32xf32, #tpu.memory_space<vmem>>, vector<1x2x32xf32>
    %179 = vector.shape_cast %178 : vector<1x2x32xf32> to vector<2x32xf32>
    %180 = vector.shape_cast %176 : vector<2x32xf32> to vector<1x2x32xf32>
    tpu.vector_store %arg4[%177, %c0_90, %c0_91], %180 {strides = array<i32>} : memref<4x2x32xf32, #tpu.memory_space<vmem>>, vector<1x2x32xf32>,
    %c0_92 = arith.constant 0 : index
    %c0_93 = arith.constant 0 : index
    %181 = vector.load %arg5[%c0_92, %c0_93] : memref<2x32xf32, #tpu.memory_space<vmem>>, vector<2x32xf32>
    tpu.vector_store %arg5[%c0_92, %c0_93], %176 {strides = array<i32>} : memref<2x32xf32, #tpu.memory_space<vmem>>, vector<2x32xf32>,
    %c0_94 = arith.constant 0 : index
    %c0_95 = arith.constant 0 : index
    %182 = vector.load %arg6[%c0_94, %c0_95] : memref<2x32xf32, #tpu.memory_space<vmem>>, vector<2x32xf32>
    tpu.vector_store %arg6[%c0_94, %c0_95], %174 {strides = array<i32>} : memref<2x32xf32, #tpu.memory_space<vmem>>, vector<2x32xf32>,
    %c4_i32 = arith.constant 4 : i32
    return
  }
  func.func @transform_0(%arg0: i32, %arg1: i32) -> (i32, i32, i32) {
    %c0_i32 = arith.constant 0 : i32
    %c0_i32_0 = arith.constant 0 : i32
    return %arg1, %arg0, %c0_i32 : i32, i32, i32
  }
  func.func @transform_1(%arg0: i32, %arg1: i32) -> (i32, i32) {
    %c0_i32 = arith.constant 0 : i32
    %c0_i32_0 = arith.constant 0 : i32
    %c0_i32_1 = arith.constant 0 : i32
    return %c0_i32, %c0_i32_0 : i32, i32
  }
  func.func @transform_2(%arg0: i32, %arg1: i32) -> (i32, i32, i32) {
    %c0_i32 = arith.constant 0 : i32
    %c0_i32_0 = arith.constant 0 : i32
    return %arg1, %arg0, %c0_i32 : i32, i32, i32
  }
}

</mosaic_0001>

<bundles_post_ra>
// kernel: bidirectional_lstm_forward.3
= control target key start
LH: loop header
LB: loop body
LE: loop exit
PB: predicated region body
PF: predicated region fallthrough
CT: control target
= control target key end

     0   :  { %8 = vsyncpa [#allocation3], 0  ;;  %s271_s0 = inlined_call_operand.hbm [shape: f32[16,16], index: 0, kind: input, shape index: {}]   ;;  %s272_s1 = inlined_call_operand.vmem [shape: f32[16,128], index: 1, kind: input, shape index: {}]   ;;  %s273_s2 = inlined_call_operand.hbm [shape: f32[1,128], index: 2, kind: input, shape index: {}]   ;;  %s274_s3 = inlined_call_operand.vmem [shape: f32[16,128], index: 3, kind: output, shape index: {}]  }
   0x1   :  { %9 = vsyncpa [#allocation5], 0  ;;  %s211_s12 = smov [#allocation2]   ;;  %s163_s16 = scalar_lea.hbm %s271_s0, 256 }
   0x2   :  { %s15_s13 = sshll.u32 %s211_s12, 4  ;;  %p164_p0 = scmp.ne.s32.totalorder %s271_s0, %s163_s16  ;;  %s16_s13 = int_to_ptr.vmem [resolvable:$true] %s15_s13 }
   0x3   :  { %p167_p1 = scmp.lt.u32.totalorder %s163_s16, %s271_s0 }
   0x5   :  { %p169_p2 = pnand %p167_p1, %p164_p0 }
   0x7   :  { %172 = shalt.err (!%p169_p2)
}
   0x8   :  { %s173_s21 = scalar_lea.vmem %s16_s13, 256  ;;  %p178_p4 = scmp.lt.s32.totalorder %s16_s13, %s16_s13 }
   0x9   :  { %p174_p3 = scmp.ne.s32.totalorder %s16_s13, %s173_s21  ;;  %p179_p5 = scmp.lt.s32.totalorder %s173_s21, %s173_s21 }
   0xb   :  { %p180_p6 = por %p179_p5, %p178_p4 }
   0xd   :  { %p181_p7 = pnand %p180_p6, %p174_p3 }
   0xf   :  { %184 = shalt.err (!%p181_p7)
}
  0x10   :  { %s212_s22 = smov 128   ;;  %s213_s23 = smov 8  }
  0x11   :  { %21 = dma.hbm_to_vmem [thread:$0]  %s271_s0, 256, %s16_s13, [#allocation3], %s212_s22, %s212_s22, %s213_s23  }
  0x12   :  { %s214_s26 = smov [#allocation4]   ;;  %s185_s30 = scalar_lea.hbm %s273_s2, 16 }
  0x13   :  { %s30_s27 = sshll.u32 %s214_s26, 4  ;;  %p186_p8 = scmp.ne.s32.totalorder %s273_s2, %s185_s30  ;;  %s31_s27 = int_to_ptr.vmem [resolvable:$true] %s30_s27 }
  0x14   :  { %p189_p9 = scmp.lt.u32.totalorder %s185_s30, %s273_s2 }
  0x16   :  { %p191_p10 = pnand %p189_p9, %p186_p8 }
  0x18   :  { %194 = shalt.err (!%p191_p10)
}
  0x19   :  { %s195_s8 = scalar_lea.vmem %s31_s27, 16  ;;  %s199_s0 = scalar_lea.vmem %s31_s27, 32 }
  0x1a   :  { %p196_p11 = scmp.ne.s32.totalorder %s31_s27, %s195_s8  ;;  %p200_p12 = scmp.lt.s32.totalorder %s31_s27, %s31_s27 }
  0x1b   :  { %p201_p13 = scmp.lt.s32.totalorder %s199_s0, %s195_s8 }
  0x1d   :  { %p202_p0 = por %p201_p13, %p200_p12 }
  0x1f   :  { %p203_p1 = pnand %p202_p0, %p196_p11 }
  0x21   :  { %206 = shalt.err (!%p203_p1)
}
  0x22   :  { %33 = dma.hbm_to_vmem [thread:$0]  %s273_s2, 16, %s31_s27, [#allocation5]  }
  0x23   :  { %207 = dma.done.wait [#allocation3], 256  }
  0x24   :  { %208 = vsyncadd [#allocation3], 4294967040 }
  0x25   :  { %209 = dma.done.wait [#allocation5], 16  }
  0x26   :  { %210 = vsyncadd [#allocation5], 4294967280  ;;  %vm51_vm0 = vcmask 130048   ;;  %v42_v0 = vld [vmem:[%s272_s1] sm:$0xff]  ;;  %v43_v1 = vld [vmem:[%s272_s1 + $0x8] sm:$0xff] }
  0x27   :  { %v40_v2 = vld [vmem:[#allocation2] sm:$0xff]  ;;  %v155_v3 = vpack.c.bf16 %v43_v1, %v42_v0  ;;  %v41_v4 = vld [vmem:[#allocation2 + $0x8] sm:$0xff]  ;;  %v141_v5 = vld [vmem:[#allocation4] ss:$0 sm:$0xff] }
  0x28   :  { %152 = vmatprep.mubr.msk.f32.mxu0 %vm51_vm0, %v40_v2 }
  0x29   :  { %156 = vmatprep.subr.bf16.mxu0 %v155_v3 }
  0x2a   :  { %158 = vmatpush3.bf16.msra.mxu0 %v155_v3 }
  0x2d   :  { %153 = vmatmul.mubr.msk.f32.vlgmr.msra.gmra.mrb[0].mxu0 %vm51_vm0, %v41_v4 }
 0x100   :  { %v154_v6 = vpop.f32.mrb[0].mxu0 }
 0x101   :  { %v130_v7 = vadd.f32 %v154_v6, %v141_v5  ;;  %v124_v8 = vpop.f32.mrb[1].mxu0 }
 0x102   :  { %v125_v9 = vadd.f32 %v141_v5, %v124_v8 }
 0x103   :  { %134 = vst [vmem:[%s274_s3 + $0x8] sm:$0xff] %v130_v7 }
 0x104   :  { %133 = vst [vmem:[%s274_s3] sm:$0xff] %v125_v9 }
 0x105   :  { %139 = vsyncpa [#allocation3], 1 }
 0x106   :  { %140 = vsyncpa [#allocation5], 1 }

// kernel: bidirectional_lstm_forward.5
= control target key start
LH: loop header
LB: loop body
LE: loop exit
PB: predicated region body
PF: predicated region fallthrough
CT: control target
= control target key end

     0   :  { %vm28_vm0 = vcmask 261120   ;;  %s239_s0 = inlined_call_operand.vmem [shape: f32[16,32], index: 0, kind: input, shape index: {}]   ;;  %s240_s1 = inlined_call_operand.vmem [shape: f32[32,128], index: 1, kind: input, shape index: {}]   ;;  %s241_s2 = inlined_call_operand.vmem [shape: f32[1,128], index: 2, kind: input, shape index: {}]   ;;  %s242_s3 = inlined_call_operand.hbm [shape: f32[16,128], index: 3, kind: output, shape index: {}]  }
   0x1   :  { %v17_v0 = vld [vmem:[%s240_s1] sm:$0xff]  ;;  %v18_v1 = vld [vmem:[%s240_s1 + $0x8] sm:$0xff]  ;;  %v19_v2 = vld [vmem:[%s240_s1 + $0x10] sm:$0xff] }
   0x2   :  { %v148_v3 = vpack.c.bf16 %v18_v1, %v17_v0  ;;  %v20_v4 = vld [vmem:[%s240_s1 + $0x18] sm:$0xff]  ;;  %v15_v5 = vld [vmem:[%s239_s0] sm:$0xff] }
   0x3   :  { %v152_v6 = vpack.c.bf16 %v20_v4, %v19_v2  ;;  %145 = vmatprep.mubr.msk.f32.mxu0 %vm28_vm0, %v15_v5 }
   0x4   :  { %8 = vsyncpa [#allocation3], 0  ;;  %149 = vmatprep.subr.bf16.mxu0 %v148_v3  ;;  %v16_v7 = vld [vmem:[%s239_s0 + $0x8] sm:$0xff]  ;;  %v128_v8 = vld [vmem:[%s241_s2] ss:$0 sm:$0xff]  ;;  %s183_s1 = smov [#allocation2]  }
   0x5   :  { %151 = vmatpush3.bf16.msra.mxu0 %v148_v3  ;;  %s117_s26 = sshll.u32 %s183_s1, 4  ;;  %s118_s26 = int_to_ptr.vmem [resolvable:$true] %s117_s26 }
   0x6   :  { %153 = vmatprep.subr.bf16.mxu0 %v152_v6  ;;  %s159_s27 = scalar_lea.vmem %s118_s26, 256  ;;  %p164_p1 = scmp.lt.s32.totalorder %s118_s26, %s118_s26 }
   0x7   :  { %p160_p0 = scmp.ne.s32.totalorder %s118_s26, %s159_s27  ;;  %p165_p2 = scmp.lt.s32.totalorder %s159_s27, %s159_s27 }
   0x9   :  { %155 = vmatpush3.bf16.msra.mxu0 %v152_v6  ;;  %p166_p3 = por %p165_p2, %p164_p1 }
   0xb   :  { %p167_p4 = pnand %p166_p3, %p160_p0 }
   0xc   :  { %146 = vmatmul.mubr.msk.f32.vlgmr.msra.gmra.mrb[0].mxu0 %vm28_vm0, %v16_v7 }
  0xdf   :  { %v147_v9 = vpop.f32.mrb[0].mxu0 }
  0xe0   :  { %v107_v10 = vadd.f32 %v147_v9, %v128_v8  ;;  %v101_v11 = vpop.f32.mrb[1].mxu0 }
  0xe1   :  { %v102_v12 = vadd.f32 %v128_v8, %v101_v11 }
  0xe2   :  { %111 = vst [vmem:[#allocation2 + $0x8] sm:$0xff] %v107_v10 }
  0xe3   :  { %110 = vst [vmem:[#allocation2] sm:$0xff] %v102_v12 }
  0xe4   :  { %170 = shalt.err (!%p167_p4)
}
  0xe5   :  { %s171_s2 = scalar_lea.hbm %s242_s3, 256 }
  0xe6   :  { %p172_p5 = scmp.ne.s32.totalorder %s242_s3, %s171_s2  ;;  %p175_p6 = scmp.lt.u32.totalorder %s171_s2, %s242_s3 }
  0xe8   :  { %p177_p7 = pnand %p175_p6, %p172_p5 }
  0xea   :  { %180 = shalt.err (!%p177_p7)
}
  0xeb   :  { %s184_s6 = smov 128   ;;  %s185_s7 = smov 8  }
  0xec   :  { %123 = dma.vmem_to_hbm [thread:$0]  %s118_s26, 256, %s242_s3, [#allocation3], %s184_s6, %s184_s6, %s185_s7  }
  0xed   :  { %181 = dma.done.wait [#allocation3], 256  }
  0xee   :  { %182 = vsyncadd [#allocation3], 4294967040 }
  0xef   :  { %127 = vsyncpa [#allocation3], 1 }

// kernel: bidirectional_lstm_forward.4
= control target key start
LH: loop header
LB: loop body
LE: loop exit
PB: predicated region body
PF: predicated region fallthrough
CT: control target
= control target key end

     0   :  { %s954_s9 = smov 0   ;;  %s956_s10 = smov 0   ;;  %s1069_s0 = inlined_call_operand.vmem [shape: f32[8,2,128], index: 0, kind: input, shape index: {}]   ;;  %s1070_s1 = inlined_call_operand.vmem [shape: f32[32,128], index: 1, kind: input, shape index: {}]   ;;  %s1071_s2 = inlined_call_operand.vmem [shape: f32[8,2,32], index: 2, kind: output, shape index: {}]  }
   0x1   :  { %s958_s11 = smov 0  }
   0x2 LB: > { %s21_s12 = sadd.s32 1, %s926_s10  ;;  %p747_p0 = scmp.ge.s32.totalorder %s930_s11, 1  ;;  %s930_s11 = sphi %s958_s11, %s12_s11   ;;  %s926_s10 = sphi %s956_s10, %s1073_s10   ;;  %s922_s9 = sphi %s954_s9, %s1072_s9  }
   0x3   : > { %p22_p1 = scmp.ge.s32.totalorder %s21_s12, 2  ;;  %p132_p2 = scmp.lt.s32.totalorder %s930_s11, 3 }
   0x5   : > { %s1075_s12 = smov (%p22_p1, %s21_s12), 0  ;;  %p133_p3 = pnand %p747_p0, %p132_p2 }
   0x6   : > { %s748_s13 = sshll.u32 (!%p133_p3), %s922_s9, 2  ;;  %p752_p5 = scmp.ne.s32.totalorder (!%p133_p3), %s922_s9, 0 }
   0x7   : > { %136 = sbr.rel (%p133_p3) target bundleno = 2864 (0xb30), region = 28  ;;  %p161_p4 = scmp.lt.s32.totalorder (!%p133_p3), %s748_s13, 7 }
   0xe   : > { %s1077_s13 = smov (!%p161_p4, %s748_s13), 7  ;;  %181 = sbr.rel (%p752_p5) target bundleno = 21 (0x15), region = 32 }
   0xf   : > { %s749_s14 = sshll.u32 %s1077_s13, 1  ;;  %vm182_vm0 = vcmask (!%p752_p5), 254976   ;;  %v932_v0 = vmov (!%p752_p5), 0.0  }
  0x10   : > { %s975_s17 = scalar_lea.vmem %s1069_s0, %s749_s14  ;;  %s980_s20 = scalar_lea.vmem %s1071_s2, %s749_s14  ;;  %183 = vst.msk [vmem:[#allocation2] sm:$0x3] (!%p752_p5), %vm182_vm0, %v932_v0  ;;  %184 = vst.msk [vmem:[#allocation3] sm:$0x3] (!%p752_p5), %vm182_vm0, %v932_v0 }
  0x15 PF: > { %v188_v1 = vld [vmem:[%s1070_s1] sm:$0xff]  ;;  %v189_v2 = vld [vmem:[%s1070_s1 + $0x8] sm:$0xff]  ;;  %v190_v3 = vld [vmem:[%s1070_s1 + $0x10] sm:$0xff]  ;;  %v933_v4 = vmov 0.0|0.0   ;;  %vm934_vm1 = vmmov 0   ;;  %v935_v7 = vmov 0.0  }
  0x16   : > { %829 = vmatprep.subr.bf16.mxu0 %v933_v4  ;;  %v992_v5 = vpack.c.bf16 %v189_v2, %v188_v1  ;;  %v191_v6 = vld [vmem:[%s1070_s1 + $0x18] sm:$0xff]  ;;  %793 = vmatprep.mubr.msk.f32.mxu0 %vm934_vm1, %v935_v7  ;;  %vm192_vm2 = vcmask 261120   ;;  %v187_v10 = vld [vmem:[%s975_s17] sm:$0x3]  ;;  %s936_s29 = smov 64   ;;  %s937_s30 = smov 32  }
  0x17   : > { %835 = vmatprep.subr.bf16.mxu1 %v933_v4  ;;  %804 = vmatprep.mubr.msk.f32.mxu1 %vm934_vm1, %v935_v7  ;;  %v833_v8 = vpack.c.bf16 %v191_v6, %v190_v3  ;;  %v185_v9 = vld [vmem:[#allocation2] sm:$0x3]  ;;  %v186_v15 = vld [vmem:[#allocation3] sm:$0x3]  ;;  %s938_s3 = smov 96   ;;  %vm297_vm3 = vcmask 254976  }
  0x18   : > { %831 = vmatpush3.bf16.msra.mxu0 %v992_v5  ;;  %837 = vmatpush3.bf16.msra.mxu1 %v992_v5  ;;  %v754_v33 = vld [vmem:[%s975_s17 + $0x2] sm:$0x3]  ;;  %v757_v55 = vld [vmem:[%s975_s17 + $0x4] sm:$0x3] }
  0x19   : > { %832 = vmatprep.subr.bf16.mxu0 %v933_v4  ;;  %838 = vmatprep.subr.bf16.mxu1 %v933_v4 }
  0x1c   : > { %834 = vmatpush3.bf16.msra.mxu0 %v833_v8  ;;  %840 = vmatpush3.bf16.msra.mxu1 %v833_v8 }
  0x1d   : > { %841 = vmatprep.subr.bf16.mxu0 %v933_v4  ;;  %847 = vmatprep.subr.bf16.mxu1 %v933_v4 }
  0x1f   : > { %794 = vmatmul.mubr.msk.f32.vlgmr.msra.gmra.mrb[0].mxu0 %vm192_vm2, %v185_v9 }
  0x20   : > { %843 = vmatpush3.bf16.msra.mxu0 %v992_v5  ;;  %815 = vmatprep.mubr.msk.f32.mxu0 %vm934_vm1, %v935_v7 }
  0x21   : > { %844 = vmatprep.subr.bf16.mxu0 %v933_v4 }
  0x24   : > { %846 = vmatpush3.bf16.msra.mxu0 %v833_v8 }
  0xf2   : > { %v262_v11 = vpop.f32.mrb[0].mxu0 }
  0xf3   : > { %v266_v12 = vadd.f32 %v262_v11, %v187_v10  ;;  %v795_v13 = vpop.f32.mrb[1].mxu0 }
  0xf4   : > { %v760_v13 = vld [vmem:[%s975_s17 + $0x6] sm:$0x3] }
  0xf5   : > { %884 = vtanh.f32 %v266_v12  ;;  %v267_v16 = vmul.f32 0.5, %v266_v12 }
  0xf7   : > { %886 = vtanh.f32 %v267_v16 }
  0xff   : > { %v885_v14 = vpop.eup %884 }
 0x100   : > { %278 = vrot.lane.b32.xlu0 %v885_v14, %s936_s29 }
 0x101   : > { %v887_v17 = vpop.eup %886 }
 0x102   : > { %v269_v18 = vmul.f32 0.5, %v887_v17 }
 0x104   : > { %273 = vrot.lane.b32.xlu0 %v186_v15, %s937_s30  ;;  %v270_v19 = vadd.f32 0.5, %v269_v18 }
 0x172   : > { %v279_v20 = vpop.permute.xlu0 %278 }
 0x173   : > { %v281_v21 = vmul.f32 %v279_v20, %v270_v19 }
 0x175   : > { %283 = vrot.lane.b32.xlu1 %v281_v21, %s937_s30 }
 0x176   : > { %v274_v22 = vpop.permute.xlu0 %273 }
 0x177   : > { %v276_v23 = vmul.f32 %v274_v22, %v270_v19 }
 0x1e7   : > { %v284_v24 = vpop.permute.xlu1 %283 }
 0x1e8   : > { %v286_v25 = vadd.f32 %v284_v24, %v276_v23 }
 0x1ea   : > { %888 = vtanh.f32 %v286_v25 }
 0x1f4   : > { %v889_v26 = vpop.eup %888 }
 0x1f5   : > { %289 = vrot.lane.b32.xlu1 %v889_v26, %s936_s29 }
 0x1f9   : > { %301 = vrot.lane.b32.xlu1 %v286_v25, %s938_s3 }
 0x267   : > { %v290_v27 = vpop.permute.xlu1 %289 }
 0x268   : > { %v292_v28 = vmul.f32 %v290_v27, %v270_v19 }
 0x26a   : > { %294 = vrot.lane.b32.xlu0 %v292_v28, %s937_s30 }
 0x26b   : > { %v302_v29 = vpop.permute.xlu1 %301 }
 0x26c   : > { %304 = vst.msk [vmem:[#allocation3] sm:$0x3] %vm297_vm3, %v302_v29 }
 0x273   : > { %v306_v30 = vld [vmem:[#allocation3] sm:$0x3] }
 0x274   : > { %393 = vrot.lane.b32.xlu1 %v306_v30, %s937_s30 }
 0x2dc   : > { %v295_v31 = vpop.permute.xlu0 %294 }
 0x2dd   : > { %298 = vst.msk [vmem:[%s980_s20] sm:$0x3] %vm297_vm3, %v295_v31  ;;  %299 = vst.msk [vmem:[#allocation2] sm:$0x3] %vm297_vm3, %v295_v31 }
 0x2e4   : > { %v305_v32 = vld [vmem:[#allocation2] sm:$0x3] }
 0x2e5   : > { %805 = vmatmul.mubr.msk.f32.vlgmr.msra.gmra.mrb[0].mxu1 %vm192_vm2, %v305_v32 }
 0x2e6   : > { %849 = vmatpush3.bf16.msra.mxu1 %v992_v5  ;;  %826 = vmatprep.mubr.msk.f32.mxu1 %vm934_vm1, %v935_v7  ;;  %v394_v44 = vpop.permute.xlu1 %393 }
 0x2e7   : > { %850 = vmatprep.subr.bf16.mxu1 %v933_v4 }
 0x2ea   : > { %852 = vmatpush3.bf16.msra.mxu1 %v833_v8 }
 0x3b8   : > { %v382_v34 = vpop.f32.mrb[0].mxu1 }
 0x3b9   : > { %v386_v35 = vadd.f32 %v754_v33, %v382_v34  ;;  %v806_v36 = vpop.f32.mrb[1].mxu1 }
 0x3bb   : > { %890 = vtanh.f32 %v386_v35  ;;  %v387_v38 = vmul.f32 0.5, %v386_v35 }
 0x3bd   : > { %892 = vtanh.f32 %v387_v38 }
 0x3c5   : > { %v891_v37 = vpop.eup %890 }
 0x3c6   : > { %398 = vrot.lane.b32.xlu0 %v891_v37, %s936_s29 }
 0x3c7   : > { %v893_v39 = vpop.eup %892 }
 0x3c8   : > { %v389_v40 = vmul.f32 0.5, %v893_v39 }
 0x3ca   : > { %v390_v41 = vadd.f32 0.5, %v389_v40 }
 0x3cc   : > { %v396_v45 = vmul.f32 %v394_v44, %v390_v41 }
 0x438   : > { %v399_v42 = vpop.permute.xlu0 %398 }
 0x439   : > { %v401_v43 = vmul.f32 %v399_v42, %v390_v41 }
 0x43b   : > { %403 = vrot.lane.b32.xlu0 %v401_v43, %s937_s30 }
 0x4ad   : > { %v404_v46 = vpop.permute.xlu0 %403 }
 0x4ae   : > { %v406_v47 = vadd.f32 %v404_v46, %v396_v45 }
 0x4b0   : > { %894 = vtanh.f32 %v406_v47 }
 0x4ba   : > { %v895_v48 = vpop.eup %894 }
 0x4bb   : > { %409 = vrot.lane.b32.xlu1 %v895_v48, %s936_s29 }
 0x4bf   : > { %421 = vrot.lane.b32.xlu1 %v406_v47, %s938_s3 }
 0x52d   : > { %v410_v49 = vpop.permute.xlu1 %409 }
 0x52e   : > { %v412_v50 = vmul.f32 %v410_v49, %v390_v41 }
 0x530   : > { %414 = vrot.lane.b32.xlu0 %v412_v50, %s937_s30 }
 0x531   : > { %v422_v51 = vpop.permute.xlu1 %421 }
 0x532   : > { %424 = vst.msk [vmem:[#allocation3] sm:$0x3] %vm297_vm3, %v422_v51 }
 0x539   : > { %v426_v52 = vld [vmem:[#allocation3] sm:$0x3] }
 0x53a   : > { %513 = vrot.lane.b32.xlu1 %v426_v52, %s937_s30 }
 0x5a2   : > { %v415_v53 = vpop.permute.xlu0 %414 }
 0x5a3   : > { %756 = vst.msk [vmem:[%s980_s20 + $0x2] sm:$0x3] %vm297_vm3, %v415_v53  ;;  %419 = vst.msk [vmem:[#allocation2] sm:$0x3] %vm297_vm3, %v415_v53 }
 0x5aa   : > { %v425_v54 = vld [vmem:[#allocation2] sm:$0x3] }
 0x5ab   : > { %816 = vmatmul.mubr.msk.f32.vlgmr.msra.gmra.mrb[2].mxu0 %vm192_vm2, %v425_v54 }
 0x5ac   : > { %v514_v2 = vpop.permute.xlu1 %513 }
 0x67e   : > { %v502_v56 = vpop.f32.mrb[2].mxu0 }
 0x67f   : > { %v506_v57 = vadd.f32 %v757_v55, %v502_v56  ;;  %v817_v58 = vpop.f32.mrb[3].mxu0 }
 0x681   : > { %896 = vtanh.f32 %v506_v57  ;;  %v507_v60 = vmul.f32 0.5, %v506_v57 }
 0x683   : > { %898 = vtanh.f32 %v507_v60 }
 0x68b   : > { %v897_v59 = vpop.eup %896 }
 0x68c   : > { %518 = vrot.lane.b32.xlu0 %v897_v59, %s936_s29 }
 0x68d   : > { %v899_v61 = vpop.eup %898 }
 0x68e   : > { %v509_v62 = vmul.f32 0.5, %v899_v61 }
 0x690   : > { %v510_v63 = vadd.f32 0.5, %v509_v62 }
 0x692   : > { %v516_v3 = vmul.f32 %v514_v2, %v510_v63 }
 0x6fe   : > { %v519_v0 = vpop.permute.xlu0 %518 }
 0x6ff   : > { %v521_v1 = vmul.f32 %v519_v0, %v510_v63 }
 0x701   : > { %523 = vrot.lane.b32.xlu0 %v521_v1, %s937_s30 }
 0x773   : > { %v524_v4 = vpop.permute.xlu0 %523 }
 0x774   : > { %v526_v5 = vadd.f32 %v524_v4, %v516_v3 }
 0x776   : > { %900 = vtanh.f32 %v526_v5 }
 0x780   : > { %v901_v6 = vpop.eup %900 }
 0x781   : > { %529 = vrot.lane.b32.xlu1 %v901_v6, %s936_s29 }
 0x785   : > { %541 = vrot.lane.b32.xlu1 %v526_v5, %s938_s3 }
 0x7f3   : > { %v530_v7 = vpop.permute.xlu1 %529 }
 0x7f4   : > { %v532_v8 = vmul.f32 %v530_v7, %v510_v63 }
 0x7f6   : > { %534 = vrot.lane.b32.xlu0 %v532_v8, %s937_s30 }
 0x7f7   : > { %v542_v9 = vpop.permute.xlu1 %541 }
 0x7f8   : > { %544 = vst.msk [vmem:[#allocation3] sm:$0x3] %vm297_vm3, %v542_v9 }
 0x7ff   : > { %v546_v10 = vld [vmem:[#allocation3] sm:$0x3] }
 0x800   : > { %633 = vrot.lane.b32.xlu1 %v546_v10, %s937_s30 }
 0x868   : > { %v535_v11 = vpop.permute.xlu0 %534 }
 0x869   : > { %759 = vst.msk [vmem:[%s980_s20 + $0x4] sm:$0x3] %vm297_vm3, %v535_v11  ;;  %539 = vst.msk [vmem:[#allocation2] sm:$0x3] %vm297_vm3, %v535_v11 }
 0x870   : > { %v545_v12 = vld [vmem:[#allocation2] sm:$0x3] }
 0x871   : > { %827 = vmatmul.mubr.msk.f32.vlgmr.msra.gmra.mrb[2].mxu1 %vm192_vm2, %v545_v12 }
 0x872   : > { %v634_v24 = vpop.permute.xlu1 %633 }
 0x944   : > { %v622_v14 = vpop.f32.mrb[2].mxu1 }
 0x945   : > { %v626_v15 = vadd.f32 %v760_v13, %v622_v14  ;;  %v828_v16 = vpop.f32.mrb[3].mxu1 }
 0x947   : > { %902 = vtanh.f32 %v626_v15  ;;  %v627_v18 = vmul.f32 0.5, %v626_v15 }
 0x949   : > { %904 = vtanh.f32 %v627_v18 }
 0x951   : > { %v903_v17 = vpop.eup %902 }
 0x952   : > { %638 = vrot.lane.b32.xlu0 %v903_v17, %s936_s29 }
 0x953   : > { %v905_v19 = vpop.eup %904 }
 0x954   : > { %v629_v20 = vmul.f32 0.5, %v905_v19 }
 0x956   : > { %v630_v21 = vadd.f32 0.5, %v629_v20 }
 0x958   : > { %v636_v25 = vmul.f32 %v634_v24, %v630_v21 }
 0x9c4   : > { %v639_v22 = vpop.permute.xlu0 %638 }
 0x9c5   : > { %v641_v23 = vmul.f32 %v639_v22, %v630_v21 }
 0x9c7   : > { %643 = vrot.lane.b32.xlu0 %v641_v23, %s937_s30 }
 0xa39   : > { %v644_v26 = vpop.permute.xlu0 %643 }
 0xa3a   : > { %v646_v27 = vadd.f32 %v644_v26, %v636_v25 }
 0xa3c   : > { %906 = vtanh.f32 %v646_v27 }
 0xa46   : > { %v907_v28 = vpop.eup %906 }
 0xa47   : > { %649 = vrot.lane.b32.xlu1 %v907_v28, %s936_s29 }
 0xa4b   : > { %661 = vrot.lane.b32.xlu1 %v646_v27, %s938_s3 }
 0xab9   : > { %v650_v29 = vpop.permute.xlu1 %649 }
 0xaba   : > { %v652_v30 = vmul.f32 %v650_v29, %v630_v21 }
 0xabc   : > { %654 = vrot.lane.b32.xlu0 %v652_v30, %s937_s30 }
 0xabd   : > { %v662_v31 = vpop.permute.xlu1 %661 }
 0xabe   : > { %664 = vst.msk [vmem:[#allocation3] sm:$0x3] %vm297_vm3, %v662_v31 }
 0xb2e   : > { %v655_v32 = vpop.permute.xlu0 %654 }
 0xb2f   : > { %762 = vst.msk [vmem:[%s980_s20 + $0x6] sm:$0x3] %vm297_vm3, %v655_v32  ;;  %659 = vst.msk [vmem:[#allocation2] sm:$0x3] %vm297_vm3, %v655_v32 }
 0xb30 PF: > { %s12_s11 = sadd.s32 1, %s930_s11   ;;  %s1072_s9 = smov %s926_s10 }
 0xb31   : > { %p9_p6 = scmp.ge.s32.totalorder %s12_s11, 4   ;;  %s1073_s10 = smov %s1075_s12 }
 0xb33   :  { %11 = sbr.rel (!%p9_p6) target bundleno = 2 (0x2), region = 68 }

</bundles_post_ra>
